<compile_context>
chip_gen: v5e
topology: v5e:2x2
jax: 0.10.0
libtpu: 0.0.40
codegen_flags: <defaults>
</compile_context>

<pallas_src>
import functools
import math

import jax
import jax.numpy as jnp
from jax.experimental import pallas as pl
from jax.experimental.pallas import tpu as pltpu


def _grad_nopad_kernel(x_ref, o_ref, *, plane_h: int):
    # x_ref / o_ref: (TR, Wp) block, TR = planes_per_block * plane_h.
    x = x_ref[...].astype(jnp.float32)   # compute in f32 (v5e has no bf16 VPU/EUP)
    tr, wp = x.shape

    # In-plane row phase and column index (TPU iotas must be >= 2-D).
    row = jax.lax.broadcasted_iota(jnp.int32, (tr, 1), 0) % plane_h
    col = jax.lax.broadcasted_iota(jnp.int32, (1, wp), 1)

    # Vertical gradient: v[h, w] = x[h+1, w] - x[h-1, w], zeros outside each
    # plane.  Shifts via XLU rotates, boundary/plane-wrap rows masked on VPU.
    x_dn = jnp.where(row == plane_h - 1, 0.0, pltpu.roll(x, shift=tr - 1, axis=0))
    x_up = jnp.where(row == 0, 0.0, pltpu.roll(x, shift=1, axis=0))
    g_v = x_dn - x_up

    # Horizontal gradient: h[h, w] = x[h, w+1] - x[h, w-1], zeros outside.
    x_rt = jnp.where(col == wp - 1, 0.0, pltpu.roll(x, shift=wp - 1, axis=1))
    x_lf = jnp.where(col == 0, 0.0, pltpu.roll(x, shift=1, axis=1))
    g_h = x_rt - x_lf

    o_ref[...] = jnp.sqrt(g_v * g_v + g_h * g_h + 1e-6).astype(o_ref.dtype)


def _choose_planes_per_block(planes, plane_h, wp, itemsize,
                             target_bytes=2 * 1024 * 1024):
    # ~2 MiB input blocks: mem-bound sweet spot, leaves VMEM headroom for
    # double buffering + f32 temporaries even on v7x's 64 MiB VMEM.
    ppb = max(1, target_bytes // max(1, plane_h * wp * itemsize))
    ppb = min(ppb, planes)
    # Keep at least 2 grid steps when possible so v7x megacore shards the work.
    if planes >= 2:
        ppb = min(ppb, -(-planes // 2))
    # Block rows (ppb * plane_h) must be a multiple of 8 (sublane tiling).
    m = 8 // math.gcd(plane_h, 8)
    ppb = max(m, -(-ppb // m) * m)
    return ppb


def get_gradient_nopadding(x: jax.Array) -> jax.Array:
    """JAX/Pallas equivalent of SPSR Get_gradient_nopadding.forward (NCHW)."""
    N, C, H, W = x.shape
    planes = N * C
    itemsize = jnp.dtype(x.dtype).itemsize

    # Flatten to a stacked-row 2-D view (no data movement).
    x2 = x.reshape(planes * H, W)

    # Lane density: pad narrow images to a 128-wide last dim.  Zero padding is
    # identical to the conv's zero padding; padded cols are sliced off below.
    wp = W if W >= 128 else 128
    if wp != W:
        x2 = jnp.pad(x2, ((0, 0), (0, wp - W)))

    ppb = _choose_planes_per_block(planes, H, wp, itemsize)
    padded_planes = -(-planes // ppb) * ppb
    if padded_planes != planes:
        x2 = jnp.pad(x2, ((0, (padded_planes - planes) * H), (0, 0)))

    rows = padded_planes * H
    tr = ppb * H
    n_blocks = padded_planes // ppb

    block_bytes = tr * wp * itemsize
    block_f32_bytes = tr * wp * 4
    # 2x double-buffered in + out, plus headroom for in-kernel f32 temporaries.
    vmem_limit = int(min(64 * 1024 * 1024,
                         max(32 * 1024 * 1024,
                             4 * block_bytes + 8 * block_f32_bytes)))

    # TODO(synk): add an H-tiled (1-row halo) path for planes too large to hold
    # a whole (H, W) plane per block in VMEM (e.g. 4K-resolution inputs).

    out2 = pl.pallas_call(
        functools.partial(_grad_nopad_kernel, plane_h=H),
        out_shape=jax.ShapeDtypeStruct((rows, wp), x.dtype),
        grid_spec=pltpu.PrefetchScalarGridSpec(
            num_scalar_prefetch=0,
            grid=(n_blocks,),
            in_specs=[pl.BlockSpec((tr, wp), lambda i: (i, 0))],
            out_specs=pl.BlockSpec((tr, wp), lambda i: (i, 0)),
        ),
        compiler_params=pltpu.CompilerParams(
            dimension_semantics=("parallel",),
            vmem_limit_bytes=vmem_limit,
        ),
        cost_estimate=pl.CostEstimate(
            flops=6 * rows * wp,
            transcendentals=rows * wp,
            bytes_accessed=2 * rows * wp * itemsize,
        ),
    )(x2)

    out2 = out2[: planes * H, :W]
    return out2.reshape(N, C, H, W)


def _reference(x: jax.Array) -> jax.Array:
    # Pure-JAX reference (shift-based, identical semantics to the PyTorch convs).
    xp_h = jnp.pad(x, ((0, 0), (0, 0), (1, 1), (0, 0)))
    g_v = xp_h[:, :, 2:, :] - xp_h[:, :, :-2, :]
    xp_w = jnp.pad(x, ((0, 0), (0, 0), (0, 0), (1, 1)))
    g_h = xp_w[:, :, :, 2:] - xp_w[:, :, :, :-2]
    return jnp.sqrt(g_v * g_v + g_h * g_h + 1e-6)


if __name__ == "__main__":
    key = jax.random.PRNGKey(0)
    x = jax.random.normal(key, (2, 4, 16, 16), dtype=jnp.float32)

    out = get_gradient_nopadding(x)
    out = jax.block_until_ready(out)

    ref = _reference(x)
    assert out.shape == (2, 4, 16, 16)
    assert jnp.allclose(out, ref, atol=1e-5, rtol=1e-5), float(
        jnp.max(jnp.abs(out - ref)))

    print("KERNEL_OK")
</pallas_src>

<mosaic_0001>
module attributes {stable_mosaic.version = 11 : i64} {
  func.func @_grad_nopad_kernel(%arg0: i32, %arg1: memref<64x128xf32, #tpu.memory_space<vmem>>, %arg2: memref<64x128xf32, #tpu.memory_space<vmem>>) attributes {dimension_semantics = [#tpu.dimension_semantics<parallel>], iteration_bounds = array<i64: 2>, scalar_prefetch = 0 : i64, scratch_operands = 0 : i64, tpu.core_type = #tpu.core_type<tc>, window_params = [{transform_indices = @transform_0, window_bounds = array<i64: 64, 128>}, {transform_indices = @transform_1, window_bounds = array<i64: 64, 128>}]} {
    %c0 = arith.constant 0 : index
    %c0_0 = arith.constant 0 : index
    %0 = vector.load %arg1[%c0, %c0_0] : memref<64x128xf32, #tpu.memory_space<vmem>>, vector<64x128xf32>
    %1 = tpu.iota {dimensions = array<i32: 0>} : vector<64x1xi32>
    %c16_i32 = arith.constant 16 : i32
    %c0_i32 = arith.constant 0 : i32
    %2 = arith.cmpi eq, %c16_i32, %c0_i32 : i32
    %c1_i32 = arith.constant 1 : i32
    %3 = arith.select %2, %c1_i32, %c16_i32 : i32
    %4 = vector.broadcast %3 : i32 to vector<64x1xi32>
    %5 = arith.remsi %1, %4 : vector<64x1xi32>
    %c0_i32_1 = arith.constant 0 : i32
    %6 = vector.broadcast %c0_i32_1 : i32 to vector<64x1xi32>
    %7 = arith.cmpi ne, %5, %6 : vector<64x1xi32>
    %c0_i32_2 = arith.constant 0 : i32
    %8 = vector.broadcast %c0_i32_2 : i32 to vector<64x1xi32>
    %9 = arith.cmpi slt, %5, %8 : vector<64x1xi32>
    %c0_i32_3 = arith.constant 0 : i32
    %10 = arith.cmpi slt, %3, %c0_i32_3 : i32
    %11 = vector.broadcast %10 : i1 to vector<64x1xi1>
    %12 = vector.broadcast %11 : vector<64x1xi1> to vector<64x1xi1>
    %13 = arith.xori %9, %12 : vector<64x1xi1>
    %14 = arith.andi %13, %7 : vector<64x1xi1>
    %15 = vector.broadcast %3 : i32 to vector<64x1xi32>
    %16 = arith.addi %5, %15 : vector<64x1xi32>
    %17 = arith.select %14, %16, %5 : vector<64x1xi1>, vector<64x1xi32>
    %18 = tpu.iota {dimensions = array<i32: 1>} : vector<1x128xi32>
    %c15_i32 = arith.constant 15 : i32
    %19 = vector.broadcast %c15_i32 : i32 to vector<64x1xi32>
    %20 = arith.cmpi eq, %17, %19 : vector<64x1xi32>
    %c63_i32 = arith.constant 63 : i32
    %21 = tpu.dynamic_rotate %0 by %c63_i32 dim 0 : vector<64x128xf32>, i32 -> vector<64x128xf32>
    %cst = arith.constant 0.000000e+00 : f32
    %22 = vector.shape_cast %20 : vector<64x1xi1> to vector<64x1xi1>
    %23 = vector.broadcast %22 : vector<64x1xi1> to vector<64x128xi1>
    %24 = vector.broadcast %cst : f32 to vector<64x128xf32>
    %25 = arith.select %23, %24, %21 : vector<64x128xi1>, vector<64x128xf32>
    %c0_i32_4 = arith.constant 0 : i32
    %26 = vector.broadcast %c0_i32_4 : i32 to vector<64x1xi32>
    %27 = arith.cmpi eq, %17, %26 : vector<64x1xi32>
    %c1_i32_5 = arith.constant 1 : i32
    %28 = tpu.dynamic_rotate %0 by %c1_i32_5 dim 0 : vector<64x128xf32>, i32 -> vector<64x128xf32>
    %cst_6 = arith.constant 0.000000e+00 : f32
    %29 = vector.shape_cast %27 : vector<64x1xi1> to vector<64x1xi1>
    %30 = vector.broadcast %29 : vector<64x1xi1> to vector<64x128xi1>
    %31 = vector.broadcast %cst_6 : f32 to vector<64x128xf32>
    %32 = arith.select %30, %31, %28 : vector<64x128xi1>, vector<64x128xf32>
    %33 = arith.subf %25, %32 : vector<64x128xf32>
    %c127_i32 = arith.constant 127 : i32
    %34 = vector.broadcast %c127_i32 : i32 to vector<1x128xi32>
    %35 = arith.cmpi eq, %18, %34 : vector<1x128xi32>
    %c127_i32_7 = arith.constant 127 : i32
    %36 = tpu.dynamic_rotate %0 by %c127_i32_7 dim 1 : vector<64x128xf32>, i32 -> vector<64x128xf32>
    %cst_8 = arith.constant 0.000000e+00 : f32
    %37 = vector.shape_cast %35 : vector<1x128xi1> to vector<1x128xi1>
    %38 = vector.broadcast %37 : vector<1x128xi1> to vector<64x128xi1>
    %39 = vector.broadcast %cst_8 : f32 to vector<64x128xf32>
    %40 = arith.select %38, %39, %36 : vector<64x128xi1>, vector<64x128xf32>
    %c0_i32_9 = arith.constant 0 : i32
    %41 = vector.broadcast %c0_i32_9 : i32 to vector<1x128xi32>
    %42 = arith.cmpi eq, %18, %41 : vector<1x128xi32>
    %c1_i32_10 = arith.constant 1 : i32
    %43 = tpu.dynamic_rotate %0 by %c1_i32_10 dim 1 : vector<64x128xf32>, i32 -> vector<64x128xf32>
    %cst_11 = arith.constant 0.000000e+00 : f32
    %44 = vector.shape_cast %42 : vector<1x128xi1> to vector<1x128xi1>
    %45 = vector.broadcast %44 : vector<1x128xi1> to vector<64x128xi1>
    %46 = vector.broadcast %cst_11 : f32 to vector<64x128xf32>
    %47 = arith.select %45, %46, %43 : vector<64x128xi1>, vector<64x128xf32>
    %48 = arith.subf %40, %47 : vector<64x128xf32>
    %49 = arith.mulf %33, %33 : vector<64x128xf32>
    %50 = arith.mulf %48, %48 : vector<64x128xf32>
    %51 = arith.addf %49, %50 : vector<64x128xf32>
    %cst_12 = arith.constant 9.99999997E-7 : f32
    %52 = vector.broadcast %cst_12 : f32 to vector<64x128xf32>
    %53 = arith.addf %51, %52 : vector<64x128xf32>
    %54 = math.sqrt %53 : vector<64x128xf32>
    %c0_13 = arith.constant 0 : index
    %c0_14 = arith.constant 0 : index
    %55 = vector.load %arg2[%c0_13, %c0_14] : memref<64x128xf32, #tpu.memory_space<vmem>>, vector<64x128xf32>
    tpu.vector_store %arg2[%c0_13, %c0_14], %54 {strides = array<i32>} : memref<64x128xf32, #tpu.memory_space<vmem>>, vector<64x128xf32>,
    return
  }
  func.func @transform_0(%arg0: i32) -> (i32, i32) {
    %c0_i32 = arith.constant 0 : i32
    %c0_i32_0 = arith.constant 0 : i32
    return %arg0, %c0_i32 : i32, i32
  }
  func.func @transform_1(%arg0: i32) -> (i32, i32) {
    %c0_i32 = arith.constant 0 : i32
    %c0_i32_0 = arith.constant 0 : i32
    return %arg0, %c0_i32 : i32, i32
  }
}

</mosaic_0001>

<bundles_post_ra>
// kernel: tpu_custom_call.1
= control target key start
LH: loop header
LB: loop body
LE: loop exit
PB: predicated region body
PF: predicated region fallthrough
CT: control target
= control target key end

     0   :  { %6 = vsyncpa [#allocation3], 0  ;;  %s1226_s0 = inlined_call_operand.hbm [shape: f32[128,128], index: 0, kind: input, shape index: {}]   ;;  %s1227_s1 = inlined_call_operand.hbm [shape: f32[128,128], index: 1, kind: output, shape index: {}]  }
   0x1   :  { %8 = vsyncpa [#allocation3 + $0x1], 0 }
   0x2   :  { %9 = vsyncpa [#allocation4], 0 }
   0x3   :  { %11 = vsyncpa [#allocation4 + $0x1], 0  ;;  %s845_s6 = smov 0   ;;  %s847_s7 = smov 0  }
   0x4   :  { %s849_s8 = smov 0   ;;  %s851_s9 = smov 0  }
   0x5 LB: > { %s866_s10 = sadd.s32 4294967295, %s827_s9   ;;  %s647_s11 = sadd.s32 4294967294, %s827_s9   ;;  %s827_s9 = sphi %s851_s9, %s1237_s9   ;;  %s823_s8 = sphi %s849_s8, %s1236_s8   ;;  %s819_s7 = sphi %s847_s7, %s1235_s7   ;;  %s815_s6 = sphi %s845_s6, %s1234_s6  }
   0x6   : > { %s870_s12 = sadd.s32 1, %s827_s9   ;;  %s24_s13 = sadd.s32 1, %s823_s8 }
   0x7   : > { %s21_s14 = ssub.s32 %s827_s9, %s870_s12  ;;  %p31_p0 = scmp.ne.s32.totalorder %s823_s8, %s819_s7 }
   0x8   : > { %p22_p1 = scmp.eq.s32.totalorder %s21_s14, 0  ;;  %p32_p2 = scmp.eq.s32.totalorder %s827_s9, 0 }
   0x9   : > { %p37_p3 = scmp.ne.s32.totalorder %s819_s7, %s815_s6  ;;  %p38_p4 = scmp.eq.s32.totalorder %s866_s10, 0 }
   0xa   : > { %s882_s15 = scalar_select %p22_p1, %s823_s8, %s24_s13  }
   0xb   : > { %p884_p5 = por %p32_p2, %p31_p0  ;;  %p888_p6 = por %p38_p4, %p37_p3 }
   0xc   : > { %p61_p7 = scmp.eq.s32.totalorder %s866_s10, 1  ;;  %p67_p8 = scmp.eq.s32.totalorder %s647_s11, 1 }
   0xd   : > { %p675_p10 = scmp.lt.s32.totalorder %s827_s9, 2  ;;  %s87_s20 = sand.u32 1, %s823_s8  }
   0xe   : > { %p895_p11 = por %p61_p7, %p31_p0  ;;  %p899_p12 = por %p67_p8, %p37_p3 }
   0xf   : > { %s661_s21 = sshll.u32 %s827_s9, 6  ;;  %s650_s22 = sshll.u32 %s87_s20, 6 }
  0x10   : > { %s96_s25 = scalar_lea.hbm %s1226_s0, %s661_s21  ;;  %s91_s27 = scalar_lea.vmem [#allocation2], %s650_s22 }
  0x11   : > { %s97_s26 = sshll.u32 %s96_s25, 4  ;;  %s99_s28 = sshll.u32 %s91_s27, 4  ;;  %s98_s26 = int_to_ptr.hbm [resolvable:$true] %s97_s26  ;;  %s100_s28 = int_to_ptr.vmem [resolvable:$true] %s99_s28 }
  0x12   : > { %p910_p13 = pnand %p675_p10, %p884_p5  ;;  %p653_p0 = scmp.ge.s32.totalorder %s827_s9, 1 }
  0x13   : > { %p107_p1 = scmp.lt.s32.totalorder %s827_s9, 3  ;;  %s88_s30 = scalar_lea.sflag [#allocation3], %s87_s20 }
  0x14   : > { %s731_s2 = sshra.s32 %s98_s26, 4  ;;  %p735_p3 = pneg %p910_p13  ;;  %s732_s2 = int_to_ptr.hbm [resolvable:$true] %s731_s2 }
  0x15   : > { %s733_s3 = scalar_lea.hbm %s732_s2, 64  ;;  %s738_s11 = scalar_lea.hbm %s1226_s0, 128 }
  0x16   : > { %p734_p2 = scmp.ne.s32.totalorder %s732_s2, %s733_s3  ;;  %p739_p5 = scmp.lt.s32.totalorder %s732_s2, %s1226_s0 }
  0x17   : > { %p740_p8 = scmp.lt.s32.totalorder %s738_s11, %s733_s3 }
  0x18   : > { %p736_p4 = pnand %p735_p3, %p734_p2 }
  0x19   : > { %p741_p10 = por %p740_p8, %p739_p5 }
  0x1a   : > { %p737_p7 = pneg %p736_p4 }
  0x1c   : > { %p742_p9 = pnand %p741_p10, %p737_p7 }
  0x1e   : > { %745 = shalt.err (!%p742_p9)
}
  0x1f   : > { %s829_s16 = smov 128   ;;  %s830_s20 = smov 8  }
  0x20   : > { %670 = dma.hbm_to_vmem [thread:$0]  (!%p910_p13), %s98_s26, 1024, %s100_s28, %s88_s30, %s829_s16, %s829_s16, %s830_s20  }
  0x21   : > { %p108_p2 = pnand %p653_p0, %p107_p1 }
  0x22   : > { %s931_s21 = sand.u32 (!%p108_p2), 1, %s819_s7  }
  0x23   : > { %111 = sbr.rel (%p108_p2) target bundleno = 232 (0xe8), region = 24  ;;  %s654_s22 = sshll.u32 (!%p108_p2), %s931_s21, 6 }
  0x24   : > { %s114_s23 = scalar_lea.sflag (!%p108_p2), [#allocation3], %s931_s21  ;;  %s117_s24 = scalar_lea.vmem (!%p108_p2), [#allocation2], %s654_s22 }
  0x28   : > { %806 = dma.done.wait (%p888_p6), %s114_s23, 1024  }
  0x29   : > { %808 = vsyncadd (%p888_p6), %s114_s23, 4294966272  ;;  %v941_v0 = vld [vmem:[%s117_s24 + $0x10] sm:$0xff]  ;;  %v943_v1 = vld [vmem:[%s117_s24] sm:$0xff]  ;;  %s831_s25 = smov 127   ;;  %s832_s17 = smov 1   ;;  %v147_v8 = vlaneseq }
  0x2a   : > { %v945_v2 = vld [vmem:[%s117_s24 + $0x20] sm:$0xff]  ;;  %365 = vrot.lane.b32.xlu1 %v941_v0, %s831_s25  ;;  %361 = vrot.lane.b32.xlu0 %v943_v1, %s831_s25  ;;  %v950_v3 = vld [vmem:[%s117_s24 + $0x18] sm:$0xff]  ;;  %v311_v10 = vrot.slane %v943_v1, 7  ;;  %v262_v12 = vrot.slane %v943_v1, 1  ;;  %v313_v22 = vrot.slane %v941_v0, 7  ;;  %v264_v43 = vrot.slane %v941_v0, 1 }
  0x2b   : > { %369 = vrot.lane.b32.xlu2 %v945_v2, %s831_s25  ;;  %v952_v4 = vld [vmem:[%s117_s24 + $0x8] sm:$0xff]  ;;  %v959_v6 = vld [vmem:[%s117_s24 + $0x38] sm:$0xff]  ;;  %v961_v7 = vld [vmem:[%s117_s24 + $0x30] sm:$0xff]  ;;  %v973_v9 = vshrl.u32 %v147_v8, 7  ;;  %v266_v19 = vrot.slane %v945_v2, 1  ;;  %v265_v20 = vrot.slane %v950_v3, 1 }
  0x2c   : > { %v954_v5 = vld [vmem:[%s117_s24 + $0x28] sm:$0xff]  ;;  %v318_v11 = vrot.slane %v959_v6, 7  ;;  %v263_v13 = vrot.slane %v952_v4, 1  ;;  %v314_v23 = vrot.slane %v950_v3, 7  ;;  %v317_v31 = vrot.slane %v961_v7, 7  ;;  %s1114_s26 = scalar_lea.vmem [#allocation5], %s654_s22 }
  0x2d   : > { %v160_v14 = vand.u32 15, %v973_v9  ;;  %vm319_vm0 = vcmp.lt.s32.totalorder %v973_v9, 1  ;;  %vm270_vm1 = vcmp.lt.s32.totalorder %v973_v9, 7  ;;  %v151_v21 = vadd.s32 24, %v973_v9  ;;  %s662_s27 = sshll.u32 %s866_s10, 6  ;;  %s571_s10 = sshll.u32 %s1114_s26, 4  ;;  %s572_s10 = int_to_ptr.vmem [resolvable:$true] %s571_s10 }
  0x2e   : > { %v327_v15 = vsel %vm319_vm0, %v318_v11, %v311_v10  ;;  %v277_v16 = vsel %vm270_vm1, %v262_v12, %v263_v13  ;;  %v274_v25 = vsel %vm270_vm1, %v265_v20, %v266_v19  ;;  %v324_v28 = vsel %vm319_vm0, %v313_v22, %v314_v23  ;;  %s570_s30 = scalar_lea.hbm %s1227_s1, %s662_s27  ;;  %s559_s3 = scalar_lea.sflag [#allocation4], %s931_s21 }
  0x2f   : > { %vm303_vm2 = vcmp.eq.s32.totalorder %v160_v14, 0  ;;  %v181_v24 = vand.u32 15, %v151_v21  ;;  %v316_v30 = vrot.slane %v954_v5, 7  ;;  %v154_v32 = vadd.s32 48, %v973_v9  ;;  %s573_s2 = sshll.u32 %s570_s30, 4  ;;  %s781_s14 = scalar_lea.hbm %s1227_s1, 128  ;;  %s574_s2 = int_to_ptr.hbm [resolvable:$true] %s573_s2 }
  0x30   : > { %v344_v17 = vsel %vm303_vm2, 0.0, %v327_v15  ;;  %v269_v33 = vrot.slane %v959_v6, 1  ;;  %v268_v34 = vrot.slane %v961_v7, 1  ;;  %v312_v41 = vrot.slane %v952_v4, 7  ;;  %s775_s4 = sshra.s32 %s574_s2, 4  ;;  %s776_s4 = int_to_ptr.hbm [resolvable:$true] %s775_s4 }
  0x31   : > { %v352_v18 = vsub.f32 %v277_v16, %v344_v17  ;;  %vm257_vm3 = vcmp.eq.s32.totalorder %v181_v24, 15  ;;  %v202_v35 = vand.u32 15, %v154_v32  ;;  %v321_v37 = vsel %vm319_vm0, %v316_v30, %v317_v31  ;;  %s777_s5 = scalar_lea.hbm %s776_s4, 64  ;;  %p782_p0 = scmp.lt.s32.totalorder %s776_s4, %s1227_s1 }
  0x32   : > { %367 = vrot.lane.b32.xlu1 %v950_v3, %s831_s25  ;;  %363 = vrot.lane.b32.xlu0 %v952_v4, %s831_s25  ;;  %v298_v27 = vsel %vm257_vm3, 0.0, %v274_v25  ;;  %v271_v38 = vsel %vm270_vm1, %v268_v34, %v269_v33  ;;  %v150_v42 = vadd.s32 16, %v973_v9  ;;  %v149_v44 = vadd.s32 8, %v973_v9  ;;  %p778_p6 = scmp.ne.s32.totalorder %s776_s4, %s777_s5  ;;  %p783_p1 = scmp.lt.s32.totalorder %s781_s14, %s777_s5 }
  0x33   : > { %371 = vrot.lane.b32.xlu2 %v954_v5, %s831_s25  ;;  %v1003_v29 = vsub.f32 %v298_v27, %v324_v28  ;;  %vm309_vm4 = vcmp.eq.s32.totalorder %v202_v35, 0  ;;  %v1026_v46 = vand.u32 127, %v147_v8  ;;  %v325_v49 = vsel %vm319_vm0, %v312_v41, %v313_v22 }
  0x34   : > { %v350_v39 = vsel %vm309_vm4, 0.0, %v321_v37  ;;  %v174_v45 = vand.u32 15, %v150_v42  ;;  %v167_v47 = vand.u32 15, %v149_v44  ;;  %v275_v50 = vsel %vm270_vm1, %v264_v43, %v265_v20  ;;  %p779_p9 = pnand %p778_p6, %p895_p11  ;;  %p784_p3 = por %p783_p1, %p782_p0 }
  0x35   : > { %v1020_v40 = vsub.f32 %v271_v38, %v350_v39  ;;  %v276_v53 = vsel %vm270_vm1, %v263_v13, %v264_v43  ;;  %v326_v54 = vsel %vm319_vm0, %v311_v10, %v312_v41  ;;  %vm387_vm7 = vcmp.eq.s32.totalorder %v1026_v46, 0 }
  0x36   : > { %vm305_vm5 = vcmp.eq.s32.totalorder %v174_v45, 0  ;;  %vm255_vm6 = vcmp.eq.s32.totalorder %v167_v47, 15  ;;  %v315_v57 = vrot.slane %v945_v2, 7  ;;  %vm360_vm8 = vcmp.eq.s32.totalorder %v1026_v46, 127  ;;  %p780_p13 = pneg %p779_p9 }
  0x37   : > { %v346_v51 = vsel %vm305_vm5, 0.0, %v325_v49  ;;  %v296_v55 = vsel %vm255_vm6, 0.0, %v276_v53  ;;  %v267_v58 = vrot.slane %v954_v5, 1  ;;  %v153_v60 = vadd.s32 40, %v973_v9 }
  0x38   : > { %v1032_v52 = vsub.f32 %v275_v50, %v346_v51  ;;  %v1039_v56 = vsub.f32 %v296_v55, %v326_v54  ;;  %v152_v61 = vadd.s32 32, %v973_v9  ;;  %v422_v10 = vmul.f32 %v352_v18, %v352_v18  ;;  %p785_p4 = pnand %p784_p3, %p780_p13 }
  0x39   : > { %v323_v14 = vsel %vm319_vm0, %v314_v23, %v315_v57  ;;  %v322_v17 = vsel %vm319_vm0, %v315_v57, %v316_v30  ;;  %v273_v20 = vsel %vm270_vm1, %v266_v19, %v267_v58  ;;  %v425_v19 = vmul.f32 %v1003_v29, %v1003_v29 }
  0x3a   : > { %375 = vrot.lane.b32.xlu1 %v959_v6, %s831_s25  ;;  %373 = vrot.lane.b32.xlu0 %v961_v7, %s831_s25  ;;  %v278_v38 = vsel %vm270_vm1, %v269_v33, %v262_v12  ;;  %v320_v39 = vsel %vm319_vm0, %v317_v31, %v318_v11 }
  0x3b   : > { %388 = vrot.lane.b32.xlu2 %v943_v1, %s832_s17 }
  0x42   : > { %392 = vrot.lane.b32.xlu1 %v941_v0, %s832_s17  ;;  %390 = vrot.lane.b32.xlu0 %v952_v4, %s832_s17  ;;  %v188_v4 = vand.u32 15, %v152_v61 }
  0x43   : > { %394 = vrot.lane.b32.xlu2 %v950_v3, %s832_s17  ;;  %v195_v3 = vand.u32 15, %v153_v60 }
  0x44   : > { %vm307_vm10 = vcmp.eq.s32.totalorder %v188_v4, 0 }
  0x45   : > { %vm259_vm9 = vcmp.eq.s32.totalorder %v195_v3, 15  ;;  %v348_v21 = vsel %vm307_vm10, 0.0, %v323_v14 }
  0x46   : > { %v1062_v24 = vsub.f32 %v273_v20, %v348_v21 }
  0x4a   : > { %398 = vrot.lane.b32.xlu1 %v954_v5, %s832_s17  ;;  %396 = vrot.lane.b32.xlu0 %v945_v2, %s832_s17  ;;  %v272_v5 = vsel %vm270_vm1, %v267_v58, %v268_v34  ;;  %v155_v2 = vadd.s32 56, %v973_v9 }
  0x4b   : > { %400 = vrot.lane.b32.xlu2 %v961_v7, %s832_s17  ;;  %v300_v16 = vsel %vm259_vm9, 0.0, %v272_v5  ;;  %v428_v7 = vmul.f32 %v1020_v40, %v1020_v40  ;;  %v424_v40 = vmul.f32 %v1032_v52, %v1032_v52  ;;  %v423_v52 = vmul.f32 %v1039_v56, %v1039_v56 }
  0x4c   : > { %v1060_v18 = vsub.f32 %v300_v16, %v322_v17  ;;  %v209_v34 = vand.u32 15, %v155_v2 }
  0x4e   : > { %vm261_vm11 = vcmp.eq.s32.totalorder %v209_v34, 15 }
  0x4f   : > { %v302_v29 = vsel %vm261_vm11, 0.0, %v278_v38 }
  0x50   : > { %v1085_v43 = vsub.f32 %v302_v29, %v320_v39  ;;  %v426_v29 = vmul.f32 %v1062_v24, %v1062_v24 }
  0x52   : > { %402 = vrot.lane.b32.xlu0 %v959_v6, %s832_s17 }
  0x85   : > { %v999_v26 = vpop.permute.xlu2 %369 }
  0x86   : > { %v383_v34 = vsel %vm360_vm8, 0.0, %v999_v26 }
  0x8d   : > { %v1010_v36 = vpop.permute.xlu2 %371 }
  0x8e   : > { %v384_v56 = vsel %vm360_vm8, 0.0, %v1010_v36  ;;  %v427_v36 = vmul.f32 %v1060_v18, %v1060_v18 }
  0x95   : > { %v389_v48 = vpop.permute.xlu2 %388 }
  0x96   : > { %v406_v59 = vsel %vm387_vm7, 0.0, %v389_v48 }
  0x9c   : > { %v366_v62 = vpop.permute.xlu1 %365  ;;  %v362_v63 = vpop.permute.xlu0 %361 }
  0x9d   : > { %v379_v0 = vsel %vm360_vm8, 0.0, %v362_v63  ;;  %v395_v13 = vpop.permute.xlu2 %394 }
  0x9e   : > { %v414_v8 = vsub.f32 %v379_v0, %v406_v59  ;;  %v409_v23 = vsel %vm387_vm7, 0.0, %v395_v13  ;;  %v381_v59 = vsel %vm360_vm8, 0.0, %v366_v62 }
  0xa0   : > { %v430_v15 = vmul.f32 %v414_v8, %v414_v8 }
  0xa2   : > { %v438_v22 = vadd.f32 %v430_v15, %v422_v10 }
  0xa4   : > { %v446_v25 = vadd.f32 1e-06, %v438_v22  ;;  %v368_v27 = vpop.permute.xlu1 %367  ;;  %v364_v28 = vpop.permute.xlu0 %363 }
  0xa5   : > { %v382_v30 = vsel %vm360_vm8, 0.0, %v368_v27  ;;  %v401_v35 = vpop.permute.xlu2 %400  ;;  %v380_v61 = vsel %vm360_vm8, 0.0, %v364_v28 }
  0xa6   : > { %715 = vrsqrt.f32 %v446_v25  ;;  %v417_v32 = vsub.f32 %v382_v30, %v409_v23  ;;  %v412_v42 = vsel %vm387_vm7, 0.0, %v401_v35  ;;  %vm461_vm12 = vcmp.eq.f32.partialorder %v446_v25, inf }
  0xa7   : > { %v464_v4 = vand.u32 2147483648, %v446_v25  ;;  %vm463_vm13 = vcmp.eq.f32.partialorder %v446_v25, 0.0 }
  0xa8   : > { %v433_v37 = vmul.f32 %v417_v32, %v417_v32 }
  0xaa   : > { %v441_v41 = vadd.f32 %v433_v37, %v425_v19 }
  0xac   : > { %v716_v1 = vpop.eup %715  ;;  %v1087_v44 = vpop.permute.xlu1 %375  ;;  %v1089_v12 = vadd.f32 1e-06, %v441_v41 }
  0xad   : > { %v374_v45 = vpop.permute.xlu0 %373  ;;  %v455_v47 = vmul.f32 %v716_v1, %v446_v25 }
  0xae   : > { %v385_v6 = vsel %vm360_vm8, 0.0, %v374_v45  ;;  %717 = vrsqrt.f32 %v1089_v12  ;;  %vm497_vm14 = vcmp.eq.f32.partialorder %v1089_v12, inf  ;;  %v500_v37 = vand.u32 2147483648, %v1089_v12 }
  0xaf   : > { %v420_v9 = vsub.f32 %v385_v6, %v412_v42  ;;  %v456_v11 = vmul.f32 %v716_v1, %v455_v47  ;;  %vm499_vm15 = vcmp.eq.f32.partialorder %v1089_v12, 0.0 }
  0xb1   : > { %v436_v31 = vmul.f32 %v420_v9, %v420_v9  ;;  %v457_v33 = vmul.f32 0.5, %v456_v11 }
  0xb3   : > { %v444_v48 = vadd.f32 %v436_v31, %v428_v7  ;;  %v458_v49 = vsub.f32 1.5, %v457_v33  ;;  %v386_v7 = vsel %vm360_vm8, 0.0, %v1087_v44  ;;  %v429_v44 = vmul.f32 %v1085_v43, %v1085_v43 }
  0xb4   : > { %v393_v51 = vpop.permute.xlu1 %392  ;;  %v718_v54 = vpop.eup %717 }
  0xb5   : > { %v1096_v50 = vadd.f32 1e-06, %v444_v48  ;;  %v391_v53 = vpop.permute.xlu0 %390  ;;  %v459_v55 = vmul.f32 %v716_v1, %v458_v49  ;;  %v408_v57 = vsel %vm387_vm7, 0.0, %v393_v51  ;;  %v491_v60 = vmul.f32 %v718_v54, %v1089_v12 }
  0xb6   : > { %v407_v58 = vsel %vm387_vm7, 0.0, %v391_v53  ;;  %v416_v0 = vsub.f32 %v381_v59, %v408_v57 }
  0xb7   : > { %719 = vrsqrt.f32 %v1096_v50  ;;  %v460_v63 = vmul.f32 %v459_v55, %v446_v25  ;;  %v415_v3 = vsub.f32 %v380_v61, %v407_v58  ;;  %v492_v8 = vmul.f32 %v718_v54, %v491_v60 }
  0xb8   : > { %v432_v62 = vmul.f32 %v416_v0, %v416_v0  ;;  %vm533_vm0 = vcmp.eq.f32.partialorder %v1096_v50, inf  ;;  %v536_v46 = vand.u32 2147483648, %v1096_v50  ;;  %vm535_vm1 = vcmp.eq.f32.partialorder %v1096_v50, 0.0 }
  0xb9   : > { %v462_v10 = vsel %vm461_vm12, %v446_v25, %v460_v63  ;;  %v431_v13 = vmul.f32 %v415_v3, %v415_v3  ;;  %v493_v14 = vmul.f32 0.5, %v492_v8 }
  0xba   : > { %v465_v5 = vsel %vm463_vm13, %v464_v4, %v462_v10  ;;  %v440_v15 = vadd.f32 %v432_v62, %v424_v40 }
  0xbb   : > { %550 = vst [vmem:[%s1114_s26] sm:$0xff] %v465_v5  ;;  %v439_v16 = vadd.f32 %v431_v13, %v423_v52  ;;  %v494_v20 = vsub.f32 1.5, %v493_v14 }
  0xbc   : > { %v399_v21 = vpop.permute.xlu1 %398  ;;  %v1121_v27 = vadd.f32 1e-06, %v440_v15 }
  0xbd   : > { %v720_v17 = vpop.eup %719  ;;  %v397_v22 = vpop.permute.xlu0 %396  ;;  %v1123_v23 = vadd.f32 1e-06, %v439_v16  ;;  %v411_v28 = vsel %vm387_vm7, 0.0, %v399_v21  ;;  %v495_v30 = vmul.f32 %v718_v54, %v494_v20 }
  0xbe   : > { %v527_v25 = vmul.f32 %v720_v17, %v1096_v50  ;;  %v419_v2 = vsub.f32 %v384_v56, %v411_v28  ;;  %721 = vrsqrt.f32 %v1121_v27  ;;  %v410_v32 = vsel %vm387_vm7, 0.0, %v397_v22 }
  0xbf   : > { %v496_v35 = vmul.f32 %v495_v30, %v1089_v12  ;;  %723 = vrsqrt.f32 %v1123_v23  ;;  %v418_v41 = vsub.f32 %v383_v34, %v410_v32  ;;  %vm485_vm2 = vcmp.eq.f32.partialorder %v1121_v27, inf }
  0xc0   : > { %v528_v19 = vmul.f32 %v720_v17, %v527_v25  ;;  %v435_v39 = vmul.f32 %v419_v2, %v419_v2  ;;  %vm487_vm3 = vcmp.eq.f32.partialorder %v1121_v27, 0.0  ;;  %v488_v13 = vand.u32 2147483648, %v1121_v27 }
  0xc1   : > { %v498_v18 = vsel %vm497_vm14, %v1089_v12, %v496_v35  ;;  %v434_v45 = vmul.f32 %v418_v41, %v418_v41  ;;  %vm473_vm4 = vcmp.eq.f32.partialorder %v1123_v23, inf  ;;  %v476_v16 = vand.u32 2147483648, %v1123_v23 }
  0xc2   : > { %v529_v38 = vmul.f32 0.5, %v528_v19  ;;  %v501_v42 = vsel %vm499_vm15, %v500_v37, %v498_v18  ;;  %v443_v1 = vadd.f32 %v435_v39, %v427_v36  ;;  %vm475_vm5 = vcmp.eq.f32.partialorder %v1123_v23, 0.0 }
  0xc3   : > { %553 = vst [vmem:[%s1114_s26 + $0x18] sm:$0xff] %v501_v42  ;;  %v442_v33 = vadd.f32 %v434_v45, %v426_v29 }
  0xc4   : > { %v530_v26 = vsub.f32 1.5, %v529_v38  ;;  %v722_v6 = vpop.eup %721  ;;  %v1147_v11 = vadd.f32 1e-06, %v443_v1 }
  0xc5   : > { %v403_v47 = vpop.permute.xlu0 %402  ;;  %v724_v31 = vpop.eup %723  ;;  %v479_v24 = vmul.f32 %v722_v6, %v1121_v27  ;;  %v1159_v54 = vadd.f32 1e-06, %v442_v33 }
  0xc6   : > { %v531_v9 = vmul.f32 %v720_v17, %v530_v26  ;;  %v413_v12 = vsel %vm387_vm7, 0.0, %v403_v47  ;;  %v467_v51 = vmul.f32 %v724_v31, %v1123_v23  ;;  %725 = vrsqrt.f32 %v1147_v11 }
  0xc7   : > { %v421_v48 = vsub.f32 %v386_v7, %v413_v12  ;;  %v480_v53 = vmul.f32 %v722_v6, %v479_v24  ;;  %727 = vrsqrt.f32 %v1159_v54  ;;  %vm521_vm6 = vcmp.eq.f32.partialorder %v1147_v11, inf }
  0xc8   : > { %v532_v49 = vmul.f32 %v531_v9, %v1096_v50  ;;  %v468_v57 = vmul.f32 %v724_v31, %v467_v51  ;;  %v524_v34 = vand.u32 2147483648, %v1147_v11  ;;  %vm523_vm7 = vcmp.eq.f32.partialorder %v1147_v11, 0.0 }
  0xc9   : > { %v437_v40 = vmul.f32 %v421_v48, %v421_v48  ;;  %v481_v59 = vmul.f32 0.5, %v480_v53  ;;  %vm509_vm8 = vcmp.eq.f32.partialorder %v1159_v54, inf  ;;  %v512_v18 = vand.u32 2147483648, %v1159_v54 }
  0xca   : > { %v534_v55 = vsel %vm533_vm0, %v1096_v50, %v532_v49  ;;  %v469_v60 = vmul.f32 0.5, %v468_v57  ;;  %vm511_vm9 = vcmp.eq.f32.partialorder %v1159_v54, 0.0 }
  0xcb   : > { %v537_v58 = vsel %vm535_vm1, %v536_v46, %v534_v55  ;;  %v445_v43 = vadd.f32 %v437_v40, %v429_v44  ;;  %v482_v61 = vsub.f32 1.5, %v481_v59 }
  0xcc   : > { %556 = vst [vmem:[%s1114_s26 + $0x30] sm:$0xff] %v537_v58  ;;  %v726_v63 = vpop.eup %725  ;;  %v470_v0 = vsub.f32 1.5, %v469_v60 }
  0xcd   : > { %v453_v3 = vadd.f32 1e-06, %v445_v43  ;;  %v483_v52 = vmul.f32 %v722_v6, %v482_v61  ;;  %v515_v4 = vmul.f32 %v726_v63, %v1147_v11  ;;  %v728_v10 = vpop.eup %727 }
  0xce   : > { %v471_v8 = vmul.f32 %v724_v31, %v470_v0  ;;  %v503_v14 = vmul.f32 %v728_v10, %v1159_v54 }
  0xcf   : > { %729 = vrsqrt.f32 %v453_v3  ;;  %v484_v50 = vmul.f32 %v483_v52, %v1121_v27  ;;  %v516_v62 = vmul.f32 %v726_v63, %v515_v4  ;;  %vm545_vm10 = vcmp.eq.f32.partialorder %v453_v3, inf }
  0xd0   : > { %v472_v5 = vmul.f32 %v471_v8, %v1123_v23  ;;  %v504_v21 = vmul.f32 %v728_v10, %v503_v14  ;;  %v548_v45 = vand.u32 2147483648, %v453_v3  ;;  %vm547_vm11 = vcmp.eq.f32.partialorder %v453_v3, 0.0 }
  0xd1   : > { %v486_v15 = vsel %vm485_vm2, %v1121_v27, %v484_v50  ;;  %v517_v17 = vmul.f32 0.5, %v516_v62 }
  0xd2   : > { %v489_v56 = vsel %vm487_vm3, %v488_v13, %v486_v15  ;;  %v474_v20 = vsel %vm473_vm4, %v1123_v23, %v472_v5  ;;  %v505_v30 = vmul.f32 0.5, %v504_v21 }
  0xd3   : > { %552 = vst [vmem:[%s1114_s26 + $0x10] sm:$0xff] %v489_v56  ;;  %v477_v22 = vsel %vm475_vm5, %v476_v16, %v474_v20  ;;  %v518_v25 = vsub.f32 1.5, %v517_v17 }
  0xd4   : > { %551 = vst [vmem:[%s1114_s26 + $0x8] sm:$0xff] %v477_v22  ;;  %v506_v19 = vsub.f32 1.5, %v505_v30 }
  0xd5   : > { %v730_v28 = vpop.eup %729  ;;  %v519_v27 = vmul.f32 %v726_v63, %v518_v25 }
  0xd6   : > { %v539_v2 = vmul.f32 %v730_v28, %v453_v3  ;;  %v507_v23 = vmul.f32 %v728_v10, %v506_v19 }
  0xd7   : > { %v520_v36 = vmul.f32 %v519_v27, %v1147_v11 }
  0xd8   : > { %v540_v32 = vmul.f32 %v730_v28, %v539_v2  ;;  %v508_v39 = vmul.f32 %v507_v23, %v1159_v54 }
  0xd9   : > { %v522_v35 = vsel %vm521_vm6, %v1147_v11, %v520_v36 }
  0xda   : > { %v541_v37 = vmul.f32 0.5, %v540_v32  ;;  %v525_v38 = vsel %vm523_vm7, %v524_v34, %v522_v35  ;;  %v510_v41 = vsel %vm509_vm8, %v1159_v54, %v508_v39 }
  0xdb   : > { %555 = vst [vmem:[%s1114_s26 + $0x28] sm:$0xff] %v525_v38  ;;  %v513_v42 = vsel %vm511_vm9, %v512_v18, %v510_v41 }
  0xdc   : > { %v542_v29 = vsub.f32 1.5, %v541_v37  ;;  %554 = vst [vmem:[%s1114_s26 + $0x20] sm:$0xff] %v513_v42 }
  0xde   : > { %v543_v26 = vmul.f32 %v730_v28, %v542_v29 }
  0xe0   : > { %v544_v1 = vmul.f32 %v543_v26, %v453_v3 }
  0xe2   : > { %v546_v47 = vsel %vm545_vm10, %v453_v3, %v544_v1 }
  0xe3   : > { %v549_v6 = vsel %vm547_vm11, %v548_v45, %v546_v47 }
  0xe4   : > { %557 = vst [vmem:[%s1114_s26 + $0x38] sm:$0xff] %v549_v6 }
  0xe5   : > { %788 = shalt.err (!%p785_p4)
}
  0xe6   : > { %s833_s21 = smov 128   ;;  %s834_s22 = smov 8  }
  0xe7   : > { %665 = dma.vmem_to_hbm [thread:$0]  (%p895_p11), %s572_s10, 1024, %s574_s2, %s559_s3, %s833_s21, %s833_s21, %s834_s22  }
  0xe8 PF: > { %s588_s23 = sand.u32 1, %s815_s6   ;;  %p1233_p7 = scmp.ge.s32.totalorder %s827_s9, 2 }
  0xe9   : > { %s589_s24 = scalar_lea.sflag [#allocation4], %s588_s23 }
  0xea   : > { %p672_p5 = pnand %p1233_p7, %p899_p12 }
  0xec   : > { %p673_p8 = pneg %p672_p5 }
  0xee   : > { %810 = dma.done.wait (%p673_p8), %s589_s24, 1024  }
  0xef   : > { %812 = vsyncadd (%p673_p8), %s589_s24, 4294966272  ;;  %p14_p10 = scmp.ge.s32.totalorder %s870_s12, 4   ;;  %s1234_s6 = smov %s819_s7 }
  0xf0   : > { %s1235_s7 = smov %s823_s8  ;;  %s1236_s8 = smov %s882_s15 }
  0xf1   : > { %s1237_s9 = smov %s870_s12  ;;  %16 = sbr.rel (!%p14_p10) target bundleno = 5 (0x5), region = 69 }
  0xf6   :  { %595 = vsyncpa [#allocation3], 1 }
  0xf7   :  { %597 = vsyncpa [#allocation3 + $0x1], 1 }
  0xf8   :  { %598 = vsyncpa [#allocation4], 1 }
  0xf9   :  { %600 = vsyncpa [#allocation4 + $0x1], 1 }

</bundles_post_ra>
